<compile_context>
chip_gen: v5e
topology: v5e:2x2
jax: 0.10.0
libtpu: 0.0.40
codegen_flags: <defaults>
</compile_context>

<pallas_src>
import jax
import jax.numpy as jnp
from jax.experimental import pallas as pl
from jax.experimental.pallas import tpu as pltpu


def _round_up(x, m):
    return (x + m - 1) // m * m


def dqn_kernel(x_ref, w1_ref, b1_ref, w2_ref, b2_ref, w3_ref, b3_ref, o_ref):
    # Layer 1: relu(x @ W1 + b1) — bf16 MXU operands, f32 accumulate.
    x = x_ref[...].astype(jnp.bfloat16)
    h1 = jnp.dot(x, w1_ref[...], preferred_element_type=jnp.float32)
    h1 = jnp.maximum(h1 + b1_ref[...], 0.0)          # f32 elementwise
    # Layer 2: relu(h1 @ W2 + b2)
    h2 = jnp.dot(h1.astype(jnp.bfloat16), w2_ref[...],
                 preferred_element_type=jnp.float32)
    h2 = jnp.maximum(h2 + b2_ref[...], 0.0)
    # Layer 3: h2 @ W3 + b3, kept in f32 (tiny; mem-bound regime, better accuracy).
    out = jnp.dot(h2, w3_ref[...], preferred_element_type=jnp.float32)
    o_ref[...] = (out + b3_ref[...]).astype(o_ref.dtype)


def prepare_params(params):
    """One-time conversion of (w1,b1,w2,b2,w3,b3) into the kernel's canonical
    layout. Call once (e.g. after each optimizer step) and reuse across
    forwards — do NOT rebuild per call."""
    w1, b1, w2, b2, w3, b3 = params
    return (w1.astype(jnp.bfloat16), b1.reshape(1, -1).astype(jnp.float32),
            w2.astype(jnp.bfloat16), b2.reshape(1, -1).astype(jnp.float32),
            w3.astype(jnp.float32),  b3.reshape(1, -1).astype(jnp.float32))


def _choose_batch_tiling(B):
    """Return (tile_b, b_padded).  Prefers >=2 grid programs (v7x dual-TC),
    large tiles (amortize ~0.35us/step overhead) and minimal batch padding."""
    if B <= 8:
        return B, B                                   # one full-extent tile
    if B <= 1024:
        tile = min(512, _round_up(pl.cdiv(B, 2), 8))  # ~2 tiles
        return tile, _round_up(B, tile)
    # Large batches: pick the tile from {1024, 512, 256} minimizing padding.
    best_tile, best_pad = 1024, (-B) % 1024
    for t in (512, 256):
        pad = (-B) % t
        if pad < best_pad:
            best_tile, best_pad = t, pad
    return best_tile, B + best_pad


def dqn_forward(x, prepared):
    """x: (B, input_dim) f32. prepared: output of prepare_params(params)."""
    w1, b1, w2, b2, w3, b3 = prepared
    B, d_in = x.shape
    h1_dim = w1.shape[1]      # 128
    h2_dim = w2.shape[1]      # 64
    d_out = w3.shape[1]

    tile_b, b_p = _choose_batch_tiling(B)
    grid = (b_p // tile_b,)

    # Pad the batch only when B is not a multiple of the chosen tile.
    x_in = x if b_p == B else jnp.zeros((b_p, d_in), x.dtype).at[:B].set(x)

    flops = 2 * b_p * (d_in * h1_dim + h1_dim * h2_dim + h2_dim * d_out)
    bytes_accessed = (x_in.size * x_in.dtype.itemsize
                      + (w1.size + w2.size) * 2 + w3.size * 4
                      + (b1.size + b2.size + b3.size) * 4
                      + b_p * d_out * 4)

    out = pl.pallas_call(
        dqn_kernel,
        out_shape=jax.ShapeDtypeStruct((b_p, d_out), jnp.float32),
        grid=grid,
        in_specs=[
            pl.BlockSpec((tile_b, d_in), lambda i: (i, 0)),    # x: batch-tiled
            pl.BlockSpec((d_in, h1_dim), lambda i: (0, 0)),    # W1 (VMEM resident)
            pl.BlockSpec((1, h1_dim), lambda i: (0, 0)),       # b1
            pl.BlockSpec((h1_dim, h2_dim), lambda i: (0, 0)),  # W2
            pl.BlockSpec((1, h2_dim), lambda i: (0, 0)),       # b2
            pl.BlockSpec((h2_dim, d_out), lambda i: (0, 0)),   # W3
            pl.BlockSpec((1, d_out), lambda i: (0, 0)),        # b3
        ],
        out_specs=pl.BlockSpec((tile_b, d_out), lambda i: (i, 0)),
        compiler_params=pltpu.CompilerParams(
            dimension_semantics=("parallel",),   # megacore shard on v7x
        ),
        cost_estimate=pl.CostEstimate(
            flops=flops, transcendentals=0, bytes_accessed=bytes_accessed),
    )(x_in, w1, b1, w2, b2, w3, b3)

    return out if b_p == B else out[:B]


def init_params(key, input_dim, output_dim):
    """Deterministic init mimicking PyTorch nn.Linear default (uniform +/- 1/sqrt(fan_in))."""
    dims = [(input_dim, 128), (128, 64), (64, output_dim)]
    params = []
    for fan_in, fan_out in dims:
        kw, kb, key = jax.random.split(key, 3)
        bound = 1.0 / jnp.sqrt(fan_in)
        w = jax.random.uniform(kw, (fan_in, fan_out), jnp.float32, -bound, bound)
        b = jax.random.uniform(kb, (1, fan_out), jnp.float32, -bound, bound)
        params += [w, b]
    return tuple(params)


def dqn_reference(x, params):
    w1, b1, w2, b2, w3, b3 = params
    h = jnp.maximum(x @ w1 + b1, 0.0)
    h = jnp.maximum(h @ w2 + b2, 0.0)
    return h @ w3 + b3


if __name__ == "__main__":
    key = jax.random.PRNGKey(0)
    input_dim, output_dim = 32, 4

    kx, kx2, kp = jax.random.split(key, 3)
    params = init_params(kp, input_dim, output_dim)
    prepared = prepare_params(params)   # prepared once, reused across forwards

    # Small inference-style batch (single full-extent tile, grid=(1,)).
    batch = 8
    x = jax.random.normal(kx, (batch, input_dim), jnp.float32)
    out = dqn_forward(x, prepared)
    jax.block_until_ready(out)
    ref = dqn_reference(x, params)
    assert out.shape == (batch, output_dim), out.shape
    assert jnp.allclose(out, ref, atol=3e-2, rtol=3e-2), (
        "mismatch vs reference (small batch): max abs err "
        f"{float(jnp.max(jnp.abs(out - ref)))}")

    # Larger batch exercising the multi-tile + batch-padding path (grid >= 2).
    batch2 = 40
    x2 = jax.random.normal(kx2, (batch2, input_dim), jnp.float32)
    out2 = dqn_forward(x2, prepared)
    jax.block_until_ready(out2)
    ref2 = dqn_reference(x2, params)
    assert out2.shape == (batch2, output_dim), out2.shape
    assert jnp.allclose(out2, ref2, atol=3e-2, rtol=3e-2), (
        "mismatch vs reference (tiled batch): max abs err "
        f"{float(jnp.max(jnp.abs(out2 - ref2)))}")

    print("KERNEL_OK")
</pallas_src>

<mosaic_0001>
module attributes {stable_mosaic.version = 11 : i64} {
  func.func @dqn_kernel(%arg0: i32, %arg1: memref<8x32xf32, #tpu.memory_space<vmem>>, %arg2: memref<32x128xbf16, #tpu.memory_space<vmem>>, %arg3: memref<1x128xf32, #tpu.memory_space<vmem>>, %arg4: memref<128x64xbf16, #tpu.memory_space<vmem>>, %arg5: memref<1x64xf32, #tpu.memory_space<vmem>>, %arg6: memref<64x4xf32, #tpu.memory_space<vmem>>, %arg7: memref<1x4xf32, #tpu.memory_space<vmem>>, %arg8: memref<8x4xf32, #tpu.memory_space<vmem>>) attributes {dimension_semantics = [#tpu.dimension_semantics<parallel>], iteration_bounds = array<i64: 1>, scalar_prefetch = 0 : i64, scratch_operands = 0 : i64, tpu.core_type = #tpu.core_type<tc>, window_params = [{transform_indices = @transform_0, window_bounds = array<i64: 8, 32>}, {pipeline_mode = #tpu.pipeline_mode<synchronous>, transform_indices = @transform_1, window_bounds = array<i64: 32, 128>}, {pipeline_mode = #tpu.pipeline_mode<synchronous>, transform_indices = @transform_2, window_bounds = array<i64: 1, 128>}, {pipeline_mode = #tpu.pipeline_mode<synchronous>, transform_indices = @transform_3, window_bounds = array<i64: 128, 64>}, {pipeline_mode = #tpu.pipeline_mode<synchronous>, transform_indices = @transform_4, window_bounds = array<i64: 1, 64>}, {pipeline_mode = #tpu.pipeline_mode<synchronous>, transform_indices = @transform_5, window_bounds = array<i64: 64, 4>}, {pipeline_mode = #tpu.pipeline_mode<synchronous>, transform_indices = @transform_6, window_bounds = array<i64: 1, 4>}, {transform_indices = @transform_7, window_bounds = array<i64: 8, 4>}]} {
    %c0 = arith.constant 0 : index
    %c0_0 = arith.constant 0 : index
    %0 = vector.load %arg1[%c0, %c0_0] : memref<8x32xf32, #tpu.memory_space<vmem>>, vector<8x32xf32>
    %1 = arith.truncf %0 : vector<8x32xf32> to vector<8x32xbf16>
    %c0_1 = arith.constant 0 : index
    %c0_2 = arith.constant 0 : index
    %2 = vector.load %arg2[%c0_1, %c0_2] : memref<32x128xbf16, #tpu.memory_space<vmem>>, vector<32x128xbf16>
    %cst = arith.constant dense<0.000000e+00> : vector<8x128xf32>
    %3 = tpu.matmul %1, %2, %cst {dimension_numbers = #tpu.dot_dimension_numbers<[1], [0], [0], [1], [0, 0, 1, 1], [], []>} : vector<8x32xbf16>, vector<32x128xbf16>, vector<8x128xf32> -> vector<8x128xf32>
    %c0_3 = arith.constant 0 : index
    %c0_4 = arith.constant 0 : index
    %4 = vector.load %arg3[%c0_3, %c0_4] : memref<1x128xf32, #tpu.memory_space<vmem>>, vector<1x128xf32>
    %5 = vector.broadcast %4 : vector<1x128xf32> to vector<8x128xf32>
    %6 = arith.addf %3, %5 : vector<8x128xf32>
    %cst_5 = arith.constant 0.000000e+00 : f32
    %7 = vector.broadcast %cst_5 : f32 to vector<8x128xf32>
    %8 = arith.maximumf %6, %7 : vector<8x128xf32>
    %9 = arith.truncf %8 : vector<8x128xf32> to vector<8x128xbf16>
    %c0_6 = arith.constant 0 : index
    %c0_7 = arith.constant 0 : index
    %10 = vector.load %arg4[%c0_6, %c0_7] : memref<128x64xbf16, #tpu.memory_space<vmem>>, vector<128x64xbf16>
    %cst_8 = arith.constant dense<0.000000e+00> : vector<8x64xf32>
    %11 = tpu.matmul %9, %10, %cst_8 {dimension_numbers = #tpu.dot_dimension_numbers<[1], [0], [0], [1], [0, 0, 1, 1], [], []>} : vector<8x128xbf16>, vector<128x64xbf16>, vector<8x64xf32> -> vector<8x64xf32>
    %c0_9 = arith.constant 0 : index
    %c0_10 = arith.constant 0 : index
    %12 = vector.load %arg5[%c0_9, %c0_10] : memref<1x64xf32, #tpu.memory_space<vmem>>, vector<1x64xf32>
    %13 = vector.broadcast %12 : vector<1x64xf32> to vector<8x64xf32>
    %14 = arith.addf %11, %13 : vector<8x64xf32>
    %cst_11 = arith.constant 0.000000e+00 : f32
    %15 = vector.broadcast %cst_11 : f32 to vector<8x64xf32>
    %16 = arith.maximumf %14, %15 : vector<8x64xf32>
    %c0_12 = arith.constant 0 : index
    %c0_13 = arith.constant 0 : index
    %17 = vector.load %arg6[%c0_12, %c0_13] : memref<64x4xf32, #tpu.memory_space<vmem>>, vector<64x4xf32>
    %cst_14 = arith.constant dense<0.000000e+00> : vector<8x4xf32>
    %18 = tpu.matmul %16, %17, %cst_14 {dimension_numbers = #tpu.dot_dimension_numbers<[1], [0], [0], [1], [0, 0, 1, 1], [], []>} : vector<8x64xf32>, vector<64x4xf32>, vector<8x4xf32> -> vector<8x4xf32>
    %c0_15 = arith.constant 0 : index
    %c0_16 = arith.constant 0 : index
    %19 = vector.load %arg7[%c0_15, %c0_16] : memref<1x4xf32, #tpu.memory_space<vmem>>, vector<1x4xf32>
    %20 = vector.broadcast %19 : vector<1x4xf32> to vector<8x4xf32>
    %21 = arith.addf %18, %20 : vector<8x4xf32>
    %c0_17 = arith.constant 0 : index
    %c0_18 = arith.constant 0 : index
    %22 = vector.load %arg8[%c0_17, %c0_18] : memref<8x4xf32, #tpu.memory_space<vmem>>, vector<8x4xf32>
    tpu.vector_store %arg8[%c0_17, %c0_18], %21 {strides = array<i32>} : memref<8x4xf32, #tpu.memory_space<vmem>>, vector<8x4xf32>,
    return
  }
  func.func @transform_0(%arg0: i32) -> (i32, i32) {
    %c0_i32 = arith.constant 0 : i32
    %c0_i32_0 = arith.constant 0 : i32
    return %arg0, %c0_i32 : i32, i32
  }
  func.func @transform_1(%arg0: i32) -> (i32, i32) {
    %c0_i32 = arith.constant 0 : i32
    %c0_i32_0 = arith.constant 0 : i32
    %c0_i32_1 = arith.constant 0 : i32
    return %c0_i32, %c0_i32_0 : i32, i32
  }
  func.func @transform_2(%arg0: i32) -> (i32, i32) {
    %c0_i32 = arith.constant 0 : i32
    %c0_i32_0 = arith.constant 0 : i32
    %c0_i32_1 = arith.constant 0 : i32
    return %c0_i32, %c0_i32_0 : i32, i32
  }
  func.func @transform_3(%arg0: i32) -> (i32, i32) {
    %c0_i32 = arith.constant 0 : i32
    %c0_i32_0 = arith.constant 0 : i32
    %c0_i32_1 = arith.constant 0 : i32
    return %c0_i32, %c0_i32_0 : i32, i32
  }
  func.func @transform_4(%arg0: i32) -> (i32, i32) {
    %c0_i32 = arith.constant 0 : i32
    %c0_i32_0 = arith.constant 0 : i32
    %c0_i32_1 = arith.constant 0 : i32
    return %c0_i32, %c0_i32_0 : i32, i32
  }
  func.func @transform_5(%arg0: i32) -> (i32, i32) {
    %c0_i32 = arith.constant 0 : i32
    %c0_i32_0 = arith.constant 0 : i32
    %c0_i32_1 = arith.constant 0 : i32
    return %c0_i32, %c0_i32_0 : i32, i32
  }
  func.func @transform_6(%arg0: i32) -> (i32, i32) {
    %c0_i32 = arith.constant 0 : i32
    %c0_i32_0 = arith.constant 0 : i32
    %c0_i32_1 = arith.constant 0 : i32
    return %c0_i32, %c0_i32_0 : i32, i32
  }
  func.func @transform_7(%arg0: i32) -> (i32, i32) {
    %c0_i32 = arith.constant 0 : i32
    %c0_i32_0 = arith.constant 0 : i32
    return %arg0, %c0_i32 : i32, i32
  }
}

</mosaic_0001>

<bundles_post_ra>
// kernel: tpu_custom_call.1
= control target key start
LH: loop header
LB: loop body
LE: loop exit
PB: predicated region body
PF: predicated region fallthrough
CT: control target
= control target key end

     0   :  { %vm49_vm0 = vcmask 261120   ;;  %vm162_vm1 = vcmask 523264   ;;  %vm186_vm2 = vcmask 31744   ;;  %s356_s1 = inlined_call_operand.vmem [shape: bf16[32,128], index: 1, kind: input, shape index: {}]   ;;  %s357_s0 = inlined_call_operand.vmem [shape: f32[8,32], index: 0, kind: input, shape index: {}]   ;;  %s358_s3 = inlined_call_operand.vmem [shape: bf16[128,64], index: 3, kind: input, shape index: {}]   ;;  %s359_s2 = inlined_call_operand.vmem [shape: f32[1,128], index: 2, kind: input, shape index: {}]   ;;  %s360_s4 = inlined_call_operand.vmem [shape: f32[1,64], index: 4, kind: input, shape index: {}]   ;;  %s361_s5 = inlined_call_operand.vmem [shape: f32[64,4], index: 5, kind: input, shape index: {}]   ;;  %s362_s6 = inlined_call_operand.vmem [shape: f32[1,4], index: 6, kind: input, shape index: {}]   ;;  %s363_s7 = inlined_call_operand.vmem [shape: f32[8,4], index: 7, kind: output, shape index: {}]  }
   0x1   :  { %v235_v0 = vld [vmem:[%s356_s1 + $0x8] sm:$0xff]  ;;  %v243_v1 = vld [vmem:[%s358_s3 + $0x38] sm:$0xff]  ;;  %v234_v2 = vld [vmem:[%s356_s1] sm:$0xff] }
   0x2   :  { %59 = vmatpush.bf16.msra.mxu0 %v235_v0  ;;  %v27_v3 = vld [vmem:[%s357_s0] sm:$0xff]  ;;  %136 = vmatpush.bf16.msra.mxu1 %v243_v1  ;;  %v242_v4 = vld [vmem:[%s358_s3 + $0x30] sm:$0xff]  ;;  %v241_v6 = vld [vmem:[%s358_s3 + $0x28] sm:$0xff] }
   0x3   :  { %v28_v5 = vpack.c.bf16 %v27_v3, %v27_v3  ;;  %v240_v7 = vld [vmem:[%s358_s3 + $0x20] sm:$0xff]  ;;  %v239_v8 = vld [vmem:[%s358_s3 + $0x18] sm:$0xff]  ;;  %v238_v9 = vld [vmem:[%s358_s3 + $0x10] sm:$0xff] }
   0x4   :  { %v237_v10 = vld [vmem:[%s358_s3 + $0x8] sm:$0xff]  ;;  %v236_v11 = vld [vmem:[%s358_s3] sm:$0xff]  ;;  %v157_v12 = vld [vmem:[%s361_s5 + $0x38] sm:$0xff] }
   0x5   :  { %v156_v13 = vld [vmem:[%s361_s5 + $0x30] sm:$0xff]  ;;  %174 = vmatpush.msra.mxu2 %v157_v12  ;;  %v155_v14 = vld [vmem:[%s361_s5 + $0x28] sm:$0xff]  ;;  %v154_v15 = vld [vmem:[%s361_s5 + $0x20] sm:$0xff] }
   0x6   :  { %60 = vmatpush.bf16.msra.mxu0 %v234_v2  ;;  %137 = vmatpush.bf16.msra.mxu1 %v242_v4  ;;  %v153_v16 = vld [vmem:[%s361_s5 + $0x18] sm:$0xff]  ;;  %v244_v17 = vld [vmem:[%s359_s2] ss:$0 sm:$0xff]  ;;  %v152_v23 = vld [vmem:[%s361_s5 + $0x10] sm:$0xff] }
   0x7   :  { %175 = vmatpush.msra.mxu2 %v156_v13  ;;  %v151_v24 = vld [vmem:[%s361_s5 + $0x8] sm:$0xff]  ;;  %v150_v25 = vld [vmem:[%s361_s5] sm:$0xff] }
   0x8   :  { %v245_v26 = vld [vmem:[%s360_s4] ss:$0 sm:$0xff] }
   0x9   :  { %200 = vmatmul.msk.bf16.vlgmr.msra.gmra.mxu0 %vm49_vm0, %v28_v5  ;;  %176 = vmatpush.msra.mxu2 %v155_v14  ;;  %v246_v31 = vld [vmem:[%s362_s6] ss:$0 sm:$0xff] }
   0xa   :  { %138 = vmatpush.bf16.msra.mxu1 %v241_v6 }
   0xb   :  { %177 = vmatpush.msra.mxu2 %v154_v15 }
   0xd   :  { %178 = vmatpush.msra.mxu2 %v153_v16 }
   0xe   :  { %139 = vmatpush.bf16.msra.mxu1 %v240_v7 }
   0xf   :  { %179 = vmatpush.msra.mxu2 %v152_v23 }
  0x11   :  { %180 = vmatpush.msra.mxu2 %v151_v24 }
  0x12   :  { %140 = vmatpush.bf16.msra.mxu1 %v239_v8 }
  0x13   :  { %181 = vmatpush.msra.mxu2 %v150_v25 }
  0x16   :  { %141 = vmatpush.bf16.msra.mxu1 %v238_v9 }
  0x1a   :  { %142 = vmatpush.bf16.msra.mxu1 %v237_v10 }
  0x1e   :  { %143 = vmatpush.bf16.msra.mxu1 %v236_v11 }
  0x86   :  { %v62_v18 = vpop.f32.mrf.mxu0 }
  0x87   :  { %v63_v19 = vadd.f32 %v244_v17, %v62_v18 }
  0x89   :  { %v66_v20 = vmax.f32 %v63_v19, 0.0 }
  0x8b   :  { %v67_v21 = vpack.c.bf16 %v66_v20, %v66_v20 }
  0x8d   :  { %144 = vmatmul.bf16.vlgmr.msra.gmra.mxu1 %v67_v21 }
  0x8e   :  { %v64_v22 = vpop.f32.mrf.mxu0 }
 0x10a   :  { %v145_v27 = vpop.f32.mrf.mxu1 }
 0x10b   :  { %v146_v28 = vadd.f32 %v245_v26, %v145_v27 }
 0x10d   :  { %v149_v29 = vmax.f32 %v146_v28, 0.0 }
 0x10f   :  { %233 = vmatmul.msk.f32.vlgmr.msra.gmra.mxu2 %vm162_vm1, %v149_v29 }
 0x112   :  { %v147_v30 = vpop.f32.mrf.mxu1 }
 0x192   :  { %v183_v32 = vpop.f32.mrf.mxu2 }
 0x193   :  { %v184_v33 = vadd.f32 %v246_v31, %v183_v32 }
 0x195   :  { %187 = vst.msk [vmem:[%s363_s7] sm:$0xff] %vm186_vm2, %v184_v33 }

</bundles_post_ra>
